<compile_context>
chip_gen: v6e
topology: v6e:2x2x1
jax: 0.10.0
libtpu: 0.0.40
codegen_flags: <defaults>
</compile_context>

<pallas_src>
import functools

import jax
import jax.numpy as jnp
from jax.experimental import pallas as pl
from jax.experimental.pallas import tpu as pltpu


def _nemoto_pooler_kernel(x_ref, o_ref, max_ref, sum_ref, *,
                          s_total, ts, need_mask):
    """One grid step over a (ts, tn) slab of the flattened (S, N) input.

    o_ref is the resident (3, tn) output block (row 0 = max, 1 = mean,
    2 = first); max_ref / sum_ref are (1, tn) f32 running accumulators.
    """
    k = pl.program_id(1)                 # reduction-axis (S) block index
    nk = pl.num_programs(1)

    x = x_ref[...]                       # (ts, tn), input dtype

    def accumulate(blk_max, blk_sum):
        @pl.when(k == 0)
        def _():
            max_ref[...] = blk_max
            sum_ref[...] = blk_sum

        @pl.when(k > 0)
        def _():
            max_ref[...] = jnp.maximum(max_ref[...], blk_max)
            sum_ref[...] = sum_ref[...] + blk_sum

    def plain():
        blk_max = jnp.max(x, axis=0, keepdims=True).astype(jnp.float32)
        # f32 accumulation without materializing a full-block f32 copy.
        blk_sum = jnp.sum(x, axis=0, keepdims=True, dtype=jnp.float32)
        accumulate(blk_max, blk_sum)

    if need_mask:
        # Only the final S-block can contain padded garbage rows; keep the
        # iota/compare/select masking off the hot path.
        @pl.when(k < nk - 1)
        def _hot():
            plain()

        @pl.when(k == nk - 1)
        def _masked():
            rows_left = s_total - k * ts
            row_ids = jax.lax.broadcasted_iota(jnp.int32, x.shape, 0)
            valid = row_ids < rows_left
            blk_max = jnp.max(jnp.where(valid, x, -jnp.inf),
                              axis=0, keepdims=True).astype(jnp.float32)
            blk_sum = jnp.sum(jnp.where(valid, x, jnp.zeros_like(x)),
                              axis=0, keepdims=True, dtype=jnp.float32)
            accumulate(blk_max, blk_sum)
    else:
        plain()

    @pl.when(k == 0)
    def _first_row():
        # first = input[0]; global row 0 lives in the k == 0 block.
        o_ref[2:3, :] = x[0:1, :].astype(o_ref.dtype)

    @pl.when(k == nk - 1)
    def _finalize():
        o_ref[0:1, :] = max_ref[...].astype(o_ref.dtype)
        o_ref[1:2, :] = (sum_ref[...] * (1.0 / s_total)).astype(o_ref.dtype)


def _chip_defaults():
    """(num_tensorcores, target_block_bytes, vmem_limit_bytes) per chip."""
    kind = ""
    try:
        kind = jax.devices()[0].device_kind.lower()
    except Exception:
        pass
    if "v7" in kind:
        # 2 TCs/chip, 64 MiB physical VMEM, ~3.2 TB/s HBM.
        return 2, 12 * 1024 * 1024, 48 * 1024 * 1024
    if "v6" in kind:
        # 1 TC, 128 MiB physical VMEM (32 MiB scoped default), ~1.4 TB/s.
        return 1, 12 * 1024 * 1024, 64 * 1024 * 1024
    # v5e / unknown: 1 TC, 16 MiB scoped default -> explicit 32 MiB limit
    # is load-bearing for the double-buffered 8 MiB input blocks.
    return 1, 8 * 1024 * 1024, 32 * 1024 * 1024


def _pick_lane_tile(n, itemsize, num_cores, target_bytes):
    """Lane tile: a multiple of 128 that divides N (unmasked stores).

    Single-TC chips get the full row width (one contiguous DMA per block);
    2-TC chips get N/2 so the 'parallel' axis keeps both cores busy.  A
    budget cap keeps a minimum-height block within the per-buffer budget.
    """
    if n % 128 != 0:
        return n                           # block dim == full array dim is legal
    min_rows = max(8, 32 // itemsize)      # packed-sublane height for the dtype
    budget_tn = max(128, (target_bytes // (min_rows * itemsize)) // 128 * 128)
    want_tn = n
    if num_cores >= 2 and n % 256 == 0:
        want_tn = n // 2                   # >= 2 parallel blocks for megacore
    if want_tn <= budget_tn:
        return want_tn
    best, cand = 128, 128
    while cand <= min(want_tn, budget_tn):
        if n % cand == 0:
            best = cand
        cand += 128
    return best


def _pick_sublane_tile(s, lane_tile, itemsize, target_bytes):
    """Reduction (S) tile sized so one input buffer is ~target_bytes,
    aligned to the dtype's packed-sublane count (8 f32 / 16 bf16 / 32 int8)."""
    align = max(8, 32 // itemsize)
    ts = target_bytes // (lane_tile * itemsize)
    if ts >= s:
        return s
    return max(align, (ts // align) * align)


def nemoto_pooler(x, *, target_block_bytes=None):
    """x: (S, B, H) -> (B, 3*H) = cat([max(x,0), mean(x,0), x[0]], axis=-1)."""
    S, B, H = x.shape
    assert jnp.issubdtype(x.dtype, jnp.floating), (
        "NemotoPooler Pallas kernel supports floating dtypes only "
        "(-inf masking and f32 mean).")

    num_cores, default_block, vmem_limit = _chip_defaults()
    if target_block_bytes is None:
        target_block_bytes = default_block

    N = B * H
    x2 = x.reshape(S, N)                   # lane-dense: features on the lane axis
    itemsize = x.dtype.itemsize

    tn = _pick_lane_tile(N, itemsize, num_cores, target_block_bytes)
    ts = _pick_sublane_tile(S, tn, itemsize, target_block_bytes)
    grid_n = N // tn
    grid_s = pl.cdiv(S, ts)
    need_mask = (S % ts) != 0

    kernel = functools.partial(
        _nemoto_pooler_kernel, s_total=S, ts=ts, need_mask=need_mask)

    out3 = pl.pallas_call(
        kernel,
        out_shape=jax.ShapeDtypeStruct((3, N), x.dtype),
        grid_spec=pltpu.PrefetchScalarGridSpec(
            num_scalar_prefetch=0,
            grid=(grid_n, grid_s),                  # S (reduction) innermost
            in_specs=[pl.BlockSpec((ts, tn), lambda j, k: (k, j))],
            out_specs=pl.BlockSpec((3, tn), lambda j, k: (0, j)),
            scratch_shapes=[pltpu.VMEM((1, tn), jnp.float32),   # running max
                            pltpu.VMEM((1, tn), jnp.float32)],  # running sum
        ),
        compiler_params=pltpu.CompilerParams(
            dimension_semantics=("parallel", "arbitrary"),
            vmem_limit_bytes=vmem_limit,
        ),
    )(x2)

    # (3, N) -> (B, 3H) concat layout; free plumbing outside the kernel.
    return jnp.transpose(out3.reshape(3, B, H), (1, 0, 2)).reshape(B, 3 * H)


if __name__ == "__main__":
    def _ref(x):
        return jnp.concatenate(
            [jnp.max(x, axis=0), jnp.mean(x, axis=0), x[0]], axis=1)

    k1, k2 = jax.random.split(jax.random.PRNGKey(0))

    # Small shape implied by the module (NemotoPooler has no parameters).
    S, B, H = 8, 2, 32
    x = jax.random.normal(k1, (S, B, H), dtype=jnp.float32)
    out = jax.block_until_ready(nemoto_pooler(x))
    ref = _ref(x)
    assert out.shape == (B, 3 * H), out.shape
    assert jnp.allclose(out, ref, atol=1e-5, rtol=1e-5), float(
        jnp.max(jnp.abs(out - ref)))

    # Exercise the S-tiled multi-block + gated masked-remainder path with a
    # tiny block-size target (still small shapes, runs fast).
    S2, B2, H2 = 37, 2, 128
    xb = jax.random.normal(k2, (S2, B2, H2), dtype=jnp.float32)
    out2 = jax.block_until_ready(
        nemoto_pooler(xb, target_block_bytes=8 * 1024))
    ref2 = _ref(xb)
    assert out2.shape == (B2, 3 * H2), out2.shape
    assert jnp.allclose(out2, ref2, atol=1e-5, rtol=1e-5), float(
        jnp.max(jnp.abs(out2 - ref2)))

    print("KERNEL_OK")
</pallas_src>

<mosaic_0001>
module attributes {stable_mosaic.version = 11 : i64} {
  func.func @_nemoto_pooler_kernel(%arg0: i32, %arg1: i32, %arg2: memref<8x64xf32, #tpu.memory_space<vmem>>, %arg3: memref<3x64xf32, #tpu.memory_space<vmem>>, %arg4: memref<1x64xf32, #tpu.memory_space<vmem>>, %arg5: memref<1x64xf32, #tpu.memory_space<vmem>>) attributes {dimension_semantics = [#tpu.dimension_semantics<parallel>, #tpu.dimension_semantics<arbitrary>], iteration_bounds = array<i64: 1, 1>, scalar_prefetch = 0 : i64, scratch_operands = 2 : i64, tpu.core_type = #tpu.core_type<tc>, window_params = [{transform_indices = @transform_0, window_bounds = array<i64: 8, 64>}, {transform_indices = @transform_1, window_bounds = array<i64: 3, 64>}]} {
    %c0 = arith.constant 0 : index
    %c0_0 = arith.constant 0 : index
    %0 = vector.load %arg2[%c0, %c0_0] : memref<8x64xf32, #tpu.memory_space<vmem>>, vector<8x64xf32>
    %cst = arith.constant dense<0xFF800000> : vector<64xf32>
    %1 = vector.multi_reduction <maximumf>, %0, %cst [0] : vector<8x64xf32> to vector<64xf32>
    %2 = vector.shape_cast %1 : vector<64xf32> to vector<1x64xf32>
    %cst_1 = arith.constant dense<0.000000e+00> : vector<64xf32>
    %3 = vector.multi_reduction <add>, %0, %cst_1 [0] : vector<8x64xf32> to vector<64xf32>
    %4 = vector.shape_cast %3 : vector<64xf32> to vector<1x64xf32>
    %c0_i32 = arith.constant 0 : i32
    %5 = arith.cmpi eq, %arg1, %c0_i32 : i32
    %6 = arith.extui %5 : i1 to i32
    %c0_i32_2 = arith.constant 0 : i32
    %7 = arith.cmpi ne, %6, %c0_i32_2 : i32
    scf.if %7 {
      %c0_9 = arith.constant 0 : index
      %c0_10 = arith.constant 0 : index
      %17 = vector.load %arg4[%c0_9, %c0_10] : memref<1x64xf32, #tpu.memory_space<vmem>>, vector<1x64xf32>
      tpu.vector_store %arg4[%c0_9, %c0_10], %2 {strides = array<i32>} : memref<1x64xf32, #tpu.memory_space<vmem>>, vector<1x64xf32>,
      %c0_11 = arith.constant 0 : index
      %c0_12 = arith.constant 0 : index
      %18 = vector.load %arg5[%c0_11, %c0_12] : memref<1x64xf32, #tpu.memory_space<vmem>>, vector<1x64xf32>
      tpu.vector_store %arg5[%c0_11, %c0_12], %4 {strides = array<i32>} : memref<1x64xf32, #tpu.memory_space<vmem>>, vector<1x64xf32>,
    } else {
    }
    %c0_i32_3 = arith.constant 0 : i32
    %8 = arith.cmpi sgt, %arg1, %c0_i32_3 : i32
    %9 = arith.extui %8 : i1 to i32
    %c0_i32_4 = arith.constant 0 : i32
    %10 = arith.cmpi ne, %9, %c0_i32_4 : i32
    scf.if %10 {
      %c0_9 = arith.constant 0 : index
      %c0_10 = arith.constant 0 : index
      %17 = vector.load %arg4[%c0_9, %c0_10] : memref<1x64xf32, #tpu.memory_space<vmem>>, vector<1x64xf32>
      %18 = arith.maximumf %17, %2 : vector<1x64xf32>
      %c0_11 = arith.constant 0 : index
      %c0_12 = arith.constant 0 : index
      %19 = vector.load %arg4[%c0_11, %c0_12] : memref<1x64xf32, #tpu.memory_space<vmem>>, vector<1x64xf32>
      tpu.vector_store %arg4[%c0_11, %c0_12], %18 {strides = array<i32>} : memref<1x64xf32, #tpu.memory_space<vmem>>, vector<1x64xf32>,
      %c0_13 = arith.constant 0 : index
      %c0_14 = arith.constant 0 : index
      %20 = vector.load %arg5[%c0_13, %c0_14] : memref<1x64xf32, #tpu.memory_space<vmem>>, vector<1x64xf32>
      %21 = arith.addf %20, %4 : vector<1x64xf32>
      %c0_15 = arith.constant 0 : index
      %c0_16 = arith.constant 0 : index
      %22 = vector.load %arg5[%c0_15, %c0_16] : memref<1x64xf32, #tpu.memory_space<vmem>>, vector<1x64xf32>
      tpu.vector_store %arg5[%c0_15, %c0_16], %21 {strides = array<i32>} : memref<1x64xf32, #tpu.memory_space<vmem>>, vector<1x64xf32>,
    } else {
    }
    %c0_i32_5 = arith.constant 0 : i32
    %11 = arith.cmpi eq, %arg1, %c0_i32_5 : i32
    %12 = arith.extui %11 : i1 to i32
    %c0_i32_6 = arith.constant 0 : i32
    %13 = arith.cmpi ne, %12, %c0_i32_6 : i32
    scf.if %13 {
      %17 = vector.extract_strided_slice %0 {offsets = [0, 0], sizes = [1, 64], strides = [1, 1]} : vector<8x64xf32> to vector<1x64xf32>
      %c2 = arith.constant 2 : index
      %c0_9 = arith.constant 0 : index
      %18 = vector.load %arg3[%c2, %c0_9] : memref<3x64xf32, #tpu.memory_space<vmem>>, vector<1x64xf32>
      tpu.vector_store %arg3[%c2, %c0_9], %17 {strides = array<i32>} : memref<3x64xf32, #tpu.memory_space<vmem>>, vector<1x64xf32>,
    } else {
    }
    %c0_i32_7 = arith.constant 0 : i32
    %14 = arith.cmpi eq, %arg1, %c0_i32_7 : i32
    %15 = arith.extui %14 : i1 to i32
    %c0_i32_8 = arith.constant 0 : i32
    %16 = arith.cmpi ne, %15, %c0_i32_8 : i32
    scf.if %16 {
      %c0_9 = arith.constant 0 : index
      %c0_10 = arith.constant 0 : index
      %17 = vector.load %arg4[%c0_9, %c0_10] : memref<1x64xf32, #tpu.memory_space<vmem>>, vector<1x64xf32>
      %c0_11 = arith.constant 0 : index
      %c0_12 = arith.constant 0 : index
      %18 = vector.load %arg3[%c0_11, %c0_12] : memref<3x64xf32, #tpu.memory_space<vmem>>, vector<1x64xf32>
      tpu.vector_store %arg3[%c0_11, %c0_12], %17 {strides = array<i32>} : memref<3x64xf32, #tpu.memory_space<vmem>>, vector<1x64xf32>,
      %c0_13 = arith.constant 0 : index
      %c0_14 = arith.constant 0 : index
      %19 = vector.load %arg5[%c0_13, %c0_14] : memref<1x64xf32, #tpu.memory_space<vmem>>, vector<1x64xf32>
      %cst_15 = arith.constant 1.250000e-01 : f32
      %20 = vector.broadcast %cst_15 : f32 to vector<1x64xf32>
      %21 = arith.mulf %19, %20 : vector<1x64xf32>
      %c1 = arith.constant 1 : index
      %c0_16 = arith.constant 0 : index
      %22 = vector.load %arg3[%c1, %c0_16] : memref<3x64xf32, #tpu.memory_space<vmem>>, vector<1x64xf32>
      tpu.vector_store %arg3[%c1, %c0_16], %21 {strides = array<i32>} : memref<3x64xf32, #tpu.memory_space<vmem>>, vector<1x64xf32>,
    } else {
    }
    return
  }
  func.func @transform_0(%arg0: i32, %arg1: i32) -> (i32, i32) {
    %c0_i32 = arith.constant 0 : i32
    return %arg1, %arg0 : i32, i32
  }
  func.func @transform_1(%arg0: i32, %arg1: i32) -> (i32, i32) {
    %c0_i32 = arith.constant 0 : i32
    %c0_i32_0 = arith.constant 0 : i32
    return %c0_i32, %arg0 : i32, i32
  }
}

</mosaic_0001>

<bundles_post_ra>
// kernel: tpu_custom_call.1
= control target key start
LH: loop header
LB: loop body
LE: loop exit
PB: predicated region body
PF: predicated region fallthrough
CT: control target
= control target key end

     0   :  { %6 = vsyncpa [#allocation5], 0  ;;  %s149_s0 = inlined_call_operand.hbm [shape: f32[8,64], index: 0, kind: input, shape index: {}]   ;;  %s150_s1 = inlined_call_operand.hbm [shape: f32[3,64], index: 1, kind: output, shape index: {}]  }
   0x1   :  { %7 = vsyncpa [#allocation6], 0  ;;  %s126_s6 = smov [#allocation4]  }
   0x2   :  { %s14_s7 = sshll.u32 %s126_s6, 4  ;;  %s15_s7 = int_to_ptr.vmem [resolvable:$true] %s14_s7 }
   0x3   :  { %s90_s8 = scalar_lea.vmem %s15_s7, 128  ;;  %p95_p1 = scmp.lt.s32.totalorder %s15_s7, %s15_s7 }
   0x4   :  { %p91_p0 = scmp.ne.s32.totalorder %s15_s7, %s90_s8  ;;  %p96_p2 = scmp.lt.s32.totalorder %s90_s8, %s90_s8 }
   0x6   :  { %p97_p3 = por %p96_p2, %p95_p1 }
   0x8   :  { %p98_p4 = pnand %p97_p3, %p91_p0 }
   0xa   :  { %101 = shalt.err (!%p98_p4)
}
   0xb   :  { %17 = dma.hbm_to_vmem [thread:$0]  %s149_s0, 128, %s15_s7, [#allocation5]  }
   0xc   :  { %122 = dma.done.wait [#allocation5], 128  }
   0xd   :  { %123 = vsyncadd [#allocation5], 4294967168  ;;  %vm22_vm0 = vcmask 523264   ;;  %v21_v0 = vld [vmem:[#allocation4] sm:$0xff]  ;;  %vm41_vm1 = vcmask 516096   ;;  %s127_s0 = smov [#allocation7]  }
   0xe   :  { %v30_v1 = vsel %vm22_vm0, %v21_v0, 0.0  ;;  %59 = vst.msk [vmem:[#allocation7 + $0x2] sm:$0x1] %vm41_vm1, %v21_v0  ;;  %v23_v2 = vsel %vm22_vm0, %v21_v0, -inf  ;;  %s71_s11 = sshll.u32 %s127_s0, 4  ;;  %s72_s11 = int_to_ptr.vmem [resolvable:$true] %s71_s11 }
   0xf   :  { %v31_v3 = vrot.slane %v30_v1, 4  ;;  %v24_v4 = vrot.slane %v23_v2, 4  ;;  %s102_s12 = scalar_lea.vmem %s72_s11, 64  ;;  %p107_p6 = scmp.lt.s32.totalorder %s72_s11, %s72_s11 }
  0x10   :  { %p103_p5 = scmp.ne.s32.totalorder %s72_s11, %s102_s12  ;;  %p108_p7 = scmp.lt.s32.totalorder %s102_s12, %s102_s12 }
  0x11   :  { %v32_v5 = vadd.f32 %v31_v3, %v30_v1  ;;  %v25_v6 = vmax.f32 %v23_v2, %v24_v4 }
  0x12   :  { %p109_p8 = por %p108_p7, %p107_p6 }
  0x13   :  { %v33_v7 = vrot.slane %v32_v5, 2  ;;  %v26_v8 = vrot.slane %v25_v6, 2 }
  0x14   :  { %p110_p9 = pnand %p109_p8, %p103_p5 }
  0x15   :  { %v34_v9 = vadd.f32 %v33_v7, %v32_v5  ;;  %v27_v10 = vmax.f32 %v25_v6, %v26_v8 }
  0x17   :  { %v35_v11 = vrot.slane %v34_v9, 1  ;;  %v28_v12 = vrot.slane %v27_v10, 1 }
  0x19   :  { %v36_v13 = vadd.f32 %v35_v11, %v34_v9  ;;  %v29_v14 = vmax.f32 %v27_v10, %v28_v12 }
  0x1b   :  { %43 = vst.msk [vmem:[#allocation3] sm:$0x1] %vm41_vm1, %v36_v13  ;;  %42 = vst.msk [vmem:[#allocation2] sm:$0x1] %vm41_vm1, %v29_v14 }
  0x22   :  { %v60_v15 = vld [vmem:[#allocation2] sm:$0x1]  ;;  %v62_v16 = vld [vmem:[#allocation3] sm:$0x1] }
  0x23   :  { %61 = vst.msk [vmem:[#allocation7] sm:$0x1] %vm41_vm1, %v60_v15  ;;  %v63_v17 = vmul.f32 0.125, %v62_v16 }
  0x25   :  { %64 = vst.msk [vmem:[#allocation7 + $0x1] sm:$0x1] %vm41_vm1, %v63_v17 }
  0x26   :  { %113 = shalt.err (!%p110_p9)
}
  0x27   :  { %74 = dma.vmem_to_hbm [thread:$0]  %s72_s11, 64, %s150_s1, [#allocation6]  }
  0x28   :  { %124 = dma.done.wait [#allocation6], 64  }
  0x29   :  { %125 = vsyncadd [#allocation6], 4294967232 }
  0x2a   :  { %78 = vsyncpa [#allocation5], 1 }
  0x2b   :  { %79 = vsyncpa [#allocation6], 1 }

</bundles_post_ra>
